<compile_context>
chip_gen: v7x
topology: tpu7x:2x2x1
jax: 0.10.0
libtpu: 0.0.40
codegen_flags: <defaults>
</compile_context>

<pallas_src>
import functools

import jax
import jax.numpy as jnp
from jax.experimental import pallas as pl
from jax.experimental.pallas import tpu as pltpu

NEG_SLOPE = 0.01  # nn.LeakyReLU() default


def _linear_kernel(x_ref, w_ref, b_ref, o_ref, *, apply_leaky):
    # Full-K contraction in one shot: bf16 operands, f32 accumulation on MXU.
    y = jnp.dot(x_ref[...], w_ref[...], preferred_element_type=jnp.float32)
    y = y + b_ref[...]                       # bias + activation epilogue in f32
    if apply_leaky:
        y = jnp.where(y >= 0, y, NEG_SLOPE * y)
    o_ref[...] = y.astype(o_ref.dtype)


def _round_up(x, m):
    return ((x + m - 1) // m) * m


def _pick_tn(N):
    # 1024-wide blocks for the big layers (4 MiB bf16 weight DMA per step),
    # 512 for the 1024-wide padded output layer so it still has 2 parallel
    # tiles (keeps both v7x TensorCores busy).
    if N >= 2048 and N % 1024 == 0:
        return 1024
    if N % 512 == 0:
        return 512
    return N


def pallas_linear(x, w, b, *, apply_leaky, out_dtype):
    """y = [leakyrelu](x @ w + b).  x: (B, K) bf16, w: (K, N) bf16, b: (N,) f32."""
    B, K = x.shape
    Kw, N = w.shape
    assert K == Kw
    tn = _pick_tn(N)
    assert N % tn == 0

    b2 = b.reshape(1, N)
    kernel = functools.partial(_linear_kernel, apply_leaky=apply_leaky)

    return pl.pallas_call(
        kernel,
        out_shape=jax.ShapeDtypeStruct((B, N), out_dtype),
        grid_spec=pltpu.PrefetchScalarGridSpec(
            num_scalar_prefetch=0,
            grid=(N // tn,),                                   # single N axis
            in_specs=[
                pl.BlockSpec((B, K), lambda j: (0, 0)),        # full activation
                pl.BlockSpec((K, tn), lambda j: (0, j)),       # streamed weights
                pl.BlockSpec((1, tn), lambda j: (0, j)),       # bias slice (f32)
            ],
            out_specs=pl.BlockSpec((B, tn), lambda j: (0, j)),
        ),
        compiler_params=pltpu.CompilerParams(
            dimension_semantics=("parallel",),
        ),
    )(x, w, b2)


# ---------------------------------------------------------------------------
# Parameter construction (deterministic, Xavier-uniform weights, zero-padded).
# ---------------------------------------------------------------------------

LAYER_DIMS = [(5, 2000), (2000, 2000), (2000, 2000), (2000, 2000),
              (2000, 2000), (2000, 2000), (2000, 800)]


def _pad_dim(d):
    if d <= 8:
        return 8
    if d <= 128:
        return 128
    return _round_up(d, 256)


def init_params(key):
    params = []
    for (fan_in, fan_out) in LAYER_DIMS:
        key, wk, bk = jax.random.split(key, 3)
        limit = (6.0 / (fan_in + fan_out)) ** 0.5   # xavier_uniform_
        w = jax.random.uniform(wk, (fan_in, fan_out), jnp.float32, -limit, limit)
        b_bound = 1.0 / (fan_in ** 0.5)             # PyTorch Linear default bias init
        b = jax.random.uniform(bk, (fan_out,), jnp.float32, -b_bound, b_bound)

        kp, np_ = _pad_dim(fan_in), _pad_dim(fan_out)
        w_pad = jnp.zeros((kp, np_), jnp.float32).at[:fan_in, :fan_out].set(w)
        b_pad = jnp.zeros((np_,), jnp.float32).at[:fan_out].set(b)
        # Stream weights as bf16 (halves HBM bytes); bias stays f32.
        params.append((w_pad.astype(jnp.bfloat16), b_pad))
    return params


# ---------------------------------------------------------------------------
# Forward pass.
# ---------------------------------------------------------------------------

def mlp_forward(x, params):
    """x: (B, 5) float32 (matches x.view(B, -1) in the PyTorch module)."""
    B, F = x.shape
    Bp = _round_up(max(B, 8), 8)
    kp0 = params[0][0].shape[0]
    # Pad batch to a multiple of 8 and input features 5 -> 8 with zeros.
    h = jnp.zeros((Bp, kp0), jnp.bfloat16).at[:B, :F].set(x.astype(jnp.bfloat16))

    n_layers = len(params)
    for i, (w, b) in enumerate(params):
        last = i == n_layers - 1
        # TODO(synk): Dropout(0.3) is treated as inference-mode identity (no RNG mask).
        h = pallas_linear(
            h, w, b,
            apply_leaky=not last,
            out_dtype=jnp.float32 if last else jnp.bfloat16,
        )
    return h[:B, :LAYER_DIMS[-1][1]]   # final out_features = 800


def mlp_reference(x, params):
    """Plain-JAX reference using the same padded bf16 params / rounding scheme."""
    B, F = x.shape
    Bp = _round_up(max(B, 8), 8)
    kp0 = params[0][0].shape[0]
    h = jnp.zeros((Bp, kp0), jnp.bfloat16).at[:B, :F].set(x.astype(jnp.bfloat16))
    n_layers = len(params)
    for i, (w, b) in enumerate(params):
        y = jnp.dot(h, w, preferred_element_type=jnp.float32) + b
        if i != n_layers - 1:
            y = jnp.where(y >= 0, y, NEG_SLOPE * y)
            h = y.astype(jnp.bfloat16)
        else:
            h = y
    return h[:B, :LAYER_DIMS[-1][1]]


if __name__ == "__main__":
    key = jax.random.PRNGKey(0)
    pkey, xkey = jax.random.split(key)
    params = init_params(pkey)

    B = 8
    x = jax.random.normal(xkey, (B, 5), jnp.float32)   # flattens to (B, 5)

    out = jax.block_until_ready(mlp_forward(x, params))
    ref = jax.block_until_ready(mlp_reference(x, params))

    assert out.shape == (B, 800), out.shape
    err = jnp.max(jnp.abs(out - ref))
    assert jnp.allclose(out, ref, atol=5e-2, rtol=5e-2), f"max abs err {err}"
    print("KERNEL_OK")
</pallas_src>

<mosaic_0001>
module attributes {stable_mosaic.version = 11 : i64} {
  func.func @_linear_kernel(%arg0: i32, %arg1: memref<8x8xbf16, #tpu.memory_space<vmem>>, %arg2: memref<8x1024xbf16, #tpu.memory_space<vmem>>, %arg3: memref<1x1024xf32, #tpu.memory_space<vmem>>, %arg4: memref<8x1024xbf16, #tpu.memory_space<vmem>>) attributes {dimension_semantics = [#tpu.dimension_semantics<parallel>], iteration_bounds = array<i64: 2>, scalar_prefetch = 0 : i64, scratch_operands = 0 : i64, tpu.core_type = #tpu.core_type<tc>, window_params = [{pipeline_mode = #tpu.pipeline_mode<synchronous>, transform_indices = @transform_0, window_bounds = array<i64: 8, 8>}, {transform_indices = @transform_1, window_bounds = array<i64: 8, 1024>}, {transform_indices = @transform_2, window_bounds = array<i64: 1, 1024>}, {transform_indices = @transform_3, window_bounds = array<i64: 8, 1024>}]} {
    %c0 = arith.constant 0 : index
    %c0_0 = arith.constant 0 : index
    %0 = vector.load %arg1[%c0, %c0_0] : memref<8x8xbf16, #tpu.memory_space<vmem>>, vector<8x8xbf16>
    %c0_1 = arith.constant 0 : index
    %c0_2 = arith.constant 0 : index
    %1 = vector.load %arg2[%c0_1, %c0_2] : memref<8x1024xbf16, #tpu.memory_space<vmem>>, vector<8x1024xbf16>
    %cst = arith.constant dense<0.000000e+00> : vector<8x1024xf32>
    %2 = tpu.matmul %0, %1, %cst {dimension_numbers = #tpu.dot_dimension_numbers<[1], [0], [0], [1], [0, 0, 1, 1], [], []>} : vector<8x8xbf16>, vector<8x1024xbf16>, vector<8x1024xf32> -> vector<8x1024xf32>
    %c0_3 = arith.constant 0 : index
    %c0_4 = arith.constant 0 : index
    %3 = vector.load %arg3[%c0_3, %c0_4] : memref<1x1024xf32, #tpu.memory_space<vmem>>, vector<1x1024xf32>
    %4 = vector.broadcast %3 : vector<1x1024xf32> to vector<8x1024xf32>
    %5 = arith.addf %2, %4 : vector<8x1024xf32>
    %cst_5 = arith.constant 0.000000e+00 : f32
    %6 = vector.broadcast %cst_5 : f32 to vector<8x1024xf32>
    %7 = arith.cmpf oge, %5, %6 : vector<8x1024xf32>
    %cst_6 = arith.constant 0.00999999977 : f32
    %8 = vector.broadcast %cst_6 : f32 to vector<8x1024xf32>
    %9 = arith.mulf %8, %5 : vector<8x1024xf32>
    %10 = arith.select %7, %5, %9 : vector<8x1024xi1>, vector<8x1024xf32>
    %11 = arith.truncf %10 : vector<8x1024xf32> to vector<8x1024xbf16>
    %c0_7 = arith.constant 0 : index
    %c0_8 = arith.constant 0 : index
    %12 = vector.load %arg4[%c0_7, %c0_8] : memref<8x1024xbf16, #tpu.memory_space<vmem>>, vector<8x1024xbf16>
    tpu.vector_store %arg4[%c0_7, %c0_8], %11 {strides = array<i32>} : memref<8x1024xbf16, #tpu.memory_space<vmem>>, vector<8x1024xbf16>,
    return
  }
  func.func @transform_0(%arg0: i32) -> (i32, i32) {
    %c0_i32 = arith.constant 0 : i32
    %c0_i32_0 = arith.constant 0 : i32
    %c0_i32_1 = arith.constant 0 : i32
    return %c0_i32, %c0_i32_0 : i32, i32
  }
  func.func @transform_1(%arg0: i32) -> (i32, i32) {
    %c0_i32 = arith.constant 0 : i32
    %c0_i32_0 = arith.constant 0 : i32
    return %c0_i32, %arg0 : i32, i32
  }
  func.func @transform_2(%arg0: i32) -> (i32, i32) {
    %c0_i32 = arith.constant 0 : i32
    %c0_i32_0 = arith.constant 0 : i32
    return %c0_i32, %arg0 : i32, i32
  }
  func.func @transform_3(%arg0: i32) -> (i32, i32) {
    %c0_i32 = arith.constant 0 : i32
    %c0_i32_0 = arith.constant 0 : i32
    return %c0_i32, %arg0 : i32, i32
  }
}

</mosaic_0001>

<bundles_post_ra>
// kernel: tpu_custom_call.1
= control target key start
LH: loop header
LB: loop body
LE: loop exit
PB: predicated region body
PF: predicated region fallthrough
CT: control target
= control target key end

     0   :  { %8 = vsyncpa [#allocation3], 0  ;;  %s1232_s0 = inlined_call_operand.hbm [shape: bf16[8,8], index: 0, kind: input, shape index: {}]   ;;  %s1233_s1 = inlined_call_operand.hbm [shape: bf16[8,2048], index: 1, kind: input, shape index: {}]   ;;  %s1234_s2 = inlined_call_operand.hbm [shape: f32[1,2048], index: 2, kind: input, shape index: {}]   ;;  %s1235_s3 = inlined_call_operand.hbm [shape: bf16[8,2048], index: 3, kind: output, shape index: {}]  }
   0x1   :  { %9 = vsyncpa [#allocation6], 0 }
   0x2   :  { %11 = vsyncpa [#allocation6 + $0x1], 0 }
   0x3   :  { %12 = vsyncpa [#allocation4], 0 }
   0x4   :  { %14 = vsyncpa [#allocation4 + $0x1], 0  ;;  %s979_s12 = smov 0   ;;  %s981_s13 = smov 0  }
   0x5   :  { %s983_s14 = smov 0   ;;  %s985_s15 = smov 0  }
   0x6 LB: > { %s1000_s16 = sadd.s32 1, %s952_s15   ;;  %s48_s17 = sadd.s32 1, %s948_s14  ;;  %s952_s15 = sphi %s985_s15, %s1258_s15   ;;  %s948_s14 = sphi %s983_s14, %s1257_s14   ;;  %s944_s13 = sphi %s981_s13, %s1256_s13   ;;  %s940_s12 = sphi %s979_s12, %s1255_s12  }
   0x7   : > { %s45_s18 = ssub.s32 %s952_s15, %s1000_s16  ;;  %p55_p0 = scmp.ne.s32.totalorder %s948_s14, %s944_s13 }
   0x8   : > { %p46_p1 = scmp.eq.s32.totalorder %s45_s18, 0  ;;  %p56_p2 = scmp.eq.s32.totalorder %s952_s15, 0 }
   0x9   : > { %p749_p4 = scmp.lt.s32.totalorder %s952_s15, 2  ;;  %s148_s20 = sand.u32 1, %s952_s15  }
   0xa   : > { %s1011_s19 = scalar_select %p46_p1, %s948_s14, %s48_s17  }
   0xb   : > { %p57_p5 = por %p56_p2, %p55_p0  ;;  %s150_s21 = sand.u32 1, %s948_s14  }
   0xc   : > { %s680_s22 = sshll.u32 %s150_s21, 5  ;;  %s716_s23 = sshll.u32 %s952_s15, 9 }
   0xd   : > { %s1022_s26 = scalar_lea.hbm %s1233_s1, %s716_s23  ;;  %s152_s27 = scalar_lea.vmem [#allocation5], %s680_s22 }
   0xe   : > { %s160_s28 = sshll.u32 %s152_s27, 4  ;;  %p1024_p6 = pnand %p749_p4, %p57_p5  ;;  %s1028_s28 = int_to_ptr.vmem [resolvable:$true] %s160_s28 }
   0xf   : > { %s1030_s30 = sshll.u32 %s150_s21, 3  ;;  %s1032_s4 = scalar_lea.sflag [#allocation6], %s148_s20 }
  0x10   : > { %s794_s5 = scalar_lea.hbm %s1022_s26, 512  ;;  %p796_p8 = pneg %p1024_p6 }
  0x11   : > { %p795_p7 = scmp.ne.s32.totalorder %s1022_s26, %s794_s5  ;;  %s799_s8 = scalar_lea.hbm %s1233_s1, 1024 }
  0x12   : > { %p800_p11 = scmp.lt.u32.totalorder %s1022_s26, %s1233_s1  ;;  %p801_p12 = scmp.lt.u32.totalorder %s799_s8, %s794_s5 }
  0x13   : > { %p797_p9 = pnand %p796_p8, %p795_p7  ;;  %p803_p1 = scmp.lt.u32.totalorder %s794_s5, %s1022_s26 }
  0x14   : > { %p802_p13 = por %p801_p12, %p800_p11 }
  0x15   : > { %p798_p10 = pneg %p797_p9 }
  0x16   : > { %p804_p2 = por %p803_p1, %p802_p13 }
  0x18   : > { %p805_p4 = pnand %p804_p2, %p798_p10 }
  0x1a   : > { %808 = shalt.err (!%p805_p4)
}
  0x1b   : > { %s809_s11 = scalar_lea.vmem %s1028_s28, 512  ;;  %s954_s17 = smov [#allocation5]  }
  0x1c   : > { %p810_p5 = scmp.ne.s32.totalorder %s1028_s28, %s809_s11  ;;  %s814_s18 = sshll.u32 %s954_s17, 4  ;;  %s815_s18 = int_to_ptr.vmem [resolvable:$false] %s814_s18 }
  0x1d   : > { %s816_s20 = scalar_lea.vmem %s815_s18, 1024  ;;  %p817_p3 = scmp.lt.s32.totalorder %s1028_s28, %s815_s18 }
  0x1e   : > { %p812_p7 = pnand %p810_p5, %p796_p8  ;;  %p818_p11 = scmp.lt.s32.totalorder %s816_s20, %s809_s11 }
  0x20   : > { %p813_p9 = pneg %p812_p7  ;;  %p819_p12 = por %p818_p11, %p817_p3 }
  0x22   : > { %p820_p13 = pnand %p819_p12, %p813_p9 }
  0x24   : > { %823 = shalt.err (!%p820_p13)
}
  0x25   : > { %740 = dma.hbm_to_vmem [thread:$0]  (!%p1024_p6), %s1022_s26, 512, %s1028_s28, %s1032_s4  }
  0x26   : > { %s1061_s21 = sadd.s32 4294967295, %s952_s15   ;;  %s676_s22 = sadd.s32 4294967294, %s952_s15  }
  0x27   : > { %p61_p3 = scmp.ne.s32.totalorder %s944_s13, %s940_s12  ;;  %p1236_p10 = scmp.eq.s32.totalorder %s1061_s21, 0 }
  0x28   : > { %p111_p1 = scmp.eq.s32.totalorder %s1061_s21, 1  ;;  %p117_p2 = scmp.eq.s32.totalorder %s676_s22, 1 }
  0x29   : > { %p677_p4 = scmp.ge.s32.totalorder %s952_s15, 1  ;;  %p1071_p5 = por %p1236_p10, %p61_p3 }
  0x2a   : > { %p1078_p7 = por %p111_p1, %p55_p0  ;;  %p1082_p9 = por %p117_p2, %p61_p3 }
  0x2b   : > { %s1242_s23 = scalar_select %p1071_p5, 1, 0 }
  0x2c   : > { %s1243_s24 = scalar_select %p1078_p7, 1, 0 }
  0x2d   : > { %s1244_s25 = scalar_select %p1082_p9, 1, 0 }
  0x2e   : > { %p124_p11 = scmp.lt.s32.totalorder %s952_s15, 3  ;;  %s955_s27 = smov [#allocation2]  }
  0x2f   : > { %s137_s28 = sshll.u32 %s955_s27, 4  ;;  %s717_s5 = sshll.u32 %s952_s15, 7  ;;  %s1091_s28 = int_to_ptr.vmem [resolvable:$true] %s137_s28 }
  0x30   : > { %p1087_p12 = pnand %p677_p4, %p124_p11  ;;  %s1099_s8 = scalar_lea.hbm %s1234_s2, %s717_s5 }
  0x31   : > { %s171_s9 = scalar_lea.vmem [#allocation7], %s1030_s30  ;;  %s824_s17 = scalar_lea.hbm %s1099_s8, 128 }
  0x32   : > { %s1245_s26 = scalar_select %p1087_p12, 1, 0 }
  0x33   : > { %p733_p0 = pneg %p1087_p12  ;;  %s179_s10 = sshll.u32 %s171_s9, 4  ;;  %s180_s10 = int_to_ptr.vmem [resolvable:$true] %s179_s10 }
  0x34   : > { %p825_p3 = scmp.ne.s32.totalorder %s1099_s8, %s824_s17  ;;  %s829_s22 = scalar_lea.hbm %s1234_s2, 256 }
  0x35   : > { %p1104_p13 = pnand %p733_p0, %p1236_p10  ;;  %p830_p4 = scmp.lt.u32.totalorder %s1099_s8, %s1234_s2 }
  0x36   : > { %p827_p1 = pnand %p825_p3, %p796_p8  ;;  %p831_p11 = scmp.lt.u32.totalorder %s829_s22, %s824_s17 }
  0x37   : > { %s1246_s11 = scalar_select %p1104_p13, 1, 0 }
  0x38   : > { %p828_p2 = pneg %p827_p1  ;;  %p832_p0 = por %p831_p11, %p830_p4 }
  0x39   : > { %p833_p10 = scmp.lt.u32.totalorder %s824_s17, %s1099_s8 }
  0x3b   : > { %p834_p9 = por %p833_p10, %p832_p0 }
  0x3d   : > { %p835_p7 = pnand %p834_p9, %p828_p2 }
  0x3f   : > { %838 = shalt.err (!%p835_p7)
}
  0x40   : > { %s839_s30 = scalar_lea.vmem %s180_s10, 128  ;;  %s956_s6 = smov [#allocation7]  }
  0x41   : > { %p840_p5 = scmp.ne.s32.totalorder %s180_s10, %s839_s30  ;;  %s844_s7 = sshll.u32 %s956_s6, 4  ;;  %s845_s7 = int_to_ptr.vmem [resolvable:$false] %s844_s7 }
  0x42   : > { %s846_s9 = scalar_lea.vmem %s845_s7, 256  ;;  %p847_p12 = scmp.lt.s32.totalorder %s180_s10, %s845_s7 }
  0x43   : > { %p842_p3 = pnand %p840_p5, %p796_p8  ;;  %p848_p13 = scmp.lt.s32.totalorder %s846_s9, %s839_s30 }
  0x45   : > { %p843_p1 = pneg %p842_p3  ;;  %p849_p4 = por %p848_p13, %p847_p12 }
  0x47   : > { %p850_p11 = pnand %p849_p4, %p843_p1 }
  0x49   : > { %853 = shalt.err (!%p850_p11)
}
  0x4a   : > { %743 = dma.hbm_to_vmem [thread:$0]  (!%p1024_p6), %s1099_s8, 128, %s180_s10, %s1032_s4  }
  0x4b   : > { %s854_s20 = scalar_lea.hbm %s1232_s0, 64  ;;  %p1247_p10 = scmp.ne.s32.totalorder %s1246_s11, 0 }
  0x4c   : > { %p855_p8 = scmp.ne.s32.totalorder %s1232_s0, %s854_s20  ;;  %p861_p12 = scmp.lt.u32.totalorder %s854_s20, %s1232_s0 }
  0x4d   : > { %p856_p5 = pneg %p1247_p10 }
  0x4f   : > { %p857_p7 = pnand %p856_p5, %p855_p8 }
  0x51   : > { %p858_p9 = pneg %p857_p7 }
  0x53   : > { %p863_p13 = pnand %p861_p12, %p858_p9 }
  0x55   : > { %866 = shalt.err (!%p863_p13)
}
  0x56   : > { %s867_s29 = scalar_lea.vmem %s1091_s28, 64  ;;  %p875_p3 = scmp.lt.s32.totalorder %s1091_s28, %s1091_s28 }
  0x57   : > { %p868_p6 = scmp.ne.s32.totalorder %s1091_s28, %s867_s29  ;;  %p876_p1 = scmp.lt.s32.totalorder %s867_s29, %s867_s29 }
  0x59   : > { %p870_p2 = pnand %p868_p6, %p856_p5  ;;  %p877_p4 = por %p876_p1, %p875_p3 }
  0x5b   : > { %p871_p0 = pneg %p870_p2 }
  0x5d   : > { %p878_p11 = pnand %p877_p4, %p871_p0 }
  0x5f   : > { %881 = shalt.err (!%p878_p11)
}
  0x60   : > { %736 = dma.hbm_to_vmem [thread:$0]  (!%p1247_p10), %s1232_s0, 64, %s1091_s28, [#allocation3]  }
  0x61   : > { %p1248_p8 = scmp.ne.s32.totalorder %s1245_s26, 0 }
  0x62   : > { %p1249_p7 = scmp.eq.s32.totalorder (!%p1248_p8), %s1061_s21, 0 }
  0x63   : > { %188 = sbr.rel (%p1248_p8) target bundleno = 362 (0x16a), region = 32 }
  0x6a   : > { %927 = dma.done.wait (%p1249_p7), [#allocation3], 64   ;;  %p1250_p5 = pmov %p1249_p7 }
  0x6b   : > { %s194_s10 = sand.u32 1, %s1061_s21   ;;  %s1157_s6 = sand.u32 1, %s944_s13  }
  0x6c   : > { %929 = vsyncadd (%p1250_p5), [#allocation3], 4294967232  ;;  %s688_s11 = sshll.u32 %s1157_s6, 5  ;;  %s195_s7 = scalar_lea.sflag [#allocation6], %s194_s10 }
  0x6d   : > { %s198_s28 = scalar_lea.vmem [#allocation5], %s688_s11  ;;  %p1251_p10 = scmp.ne.s32.totalorder %s1242_s23, 0 }
  0x6f   : > { %931 = dma.done.wait (%p1251_p10), %s195_s7, 640  }
  0x70   : > { %933 = vsyncadd (%p1251_p10), %s195_s7, 4294966656  ;;  %v957_v0 = vmov 0   ;;  %v240_v1 = vld [vmem:[%s198_s28] sm:$0xff]  ;;  %vm310_vm0 = vcmask 1043456   ;;  %v241_v2 = vld [vmem:[%s198_s28 + $0x8] sm:$0xff]  ;;  %vm306_vm1 = vcmask 64512   ;;  %v246_v18 = vlaneseq }
  0x71   : > { %367 = vmatprep.mubr.bf16.mxu0 %v957_v0  ;;  %408 = vmatprep.mubr.bf16.mxu1 %v957_v0  ;;  %v692_v3 = vcombine.high %v240_v1, %v240_v1  ;;  %v694_v4 = vcombine.high %v241_v2, %v241_v2  ;;  %v691_v5 = vcombine.low %v240_v1, %v240_v1  ;;  %v242_v7 = vld [vmem:[%s198_s28 + $0x10] sm:$0xff]  ;;  %v243_v8 = vld [vmem:[%s198_s28 + $0x18] sm:$0xff]  ;;  %s689_s23 = sshll.u32 %s1157_s6, 3  ;;  %s1177_s9 = scalar_lea.vmem [#allocation8], %s688_s11 }
  0x72   : > { %v693_v6 = vcombine.low %v241_v2, %v241_v2  ;;  %v696_v9 = vcombine.high %v242_v7, %v242_v7  ;;  %v698_v10 = vcombine.high %v243_v8, %v243_v8  ;;  %v695_v11 = vcombine.low %v242_v7, %v242_v7  ;;  %v239_v15 = vld [vmem:[#allocation2] sm:$0xf]  ;;  %s207_s26 = scalar_lea.vmem [#allocation7], %s689_s23  ;;  %s722_s17 = sshll.u32 %s1061_s21, 9 }
  0x73   : > { %v697_v12 = vcombine.low %v243_v8, %v243_v8  ;;  %699 = vmatprep.subr.msk.bf16.mxu0 %vm310_vm0, %v692_v3  ;;  %701 = vmatprep.subr.msk.bf16.mxu1 %vm310_vm0, %v694_v4  ;;  %v312_v13 = vsel %vm310_vm0, %v691_v5, 0  ;;  %v247_v19 = vshrl.u32 %v246_v18, 7  ;;  %v244_v22 = vld [vmem:[%s207_s26] sm:$0xff]  ;;  %s574_s18 = sshll.u32 %s1177_s9, 4  ;;  %s1186_s22 = scalar_lea.hbm %s1235_s3, %s722_s17  ;;  %s1188_s18 = int_to_ptr.vmem [resolvable:$true] %s574_s18 }
  0x74   : > { %v318_v14 = vsel %vm310_vm0, %v693_v6, 0  ;;  %336 = vmatpush1.bf16.msra.mxu0 %v312_v13  ;;  %v324_v16 = vsel %vm310_vm0, %v695_v11, 0  ;;  %s560_s27 = scalar_lea.sflag [#allocation4], %s1157_s6  ;;  %s882_s5 = scalar_lea.vmem %s1188_s18, 512 }
  0x75   : > { %377 = vmatpush1.bf16.msra.mxu1 %v318_v14  ;;  %703 = vmatprep.subr.msk.bf16.mxu0 %vm310_vm0, %v696_v9  ;;  %v330_v17 = vsel %vm310_vm0, %v697_v12, 0  ;;  %v248_v20 = vsub.s32 0, %v247_v19  ;;  %v256_v21 = vsub.s32 2, %v247_v19  ;;  %v252_v23 = vsub.s32 1, %v247_v19  ;;  %p883_p9 = scmp.ne.s32.totalorder %s1188_s18, %s882_s5  ;;  %p1252_p12 = scmp.ne.s32.totalorder %s1243_s24, 0 }
  0x76   : > { %705 = vmatprep.subr.msk.bf16.mxu1 %vm310_vm0, %v698_v10  ;;  %v260_v24 = vsub.s32 3, %v247_v19  ;;  %v264_v35 = vsub.s32 4, %v247_v19  ;;  %v272_v36 = vsub.s32 6, %v247_v19  ;;  %v268_v41 = vsub.s32 5, %v247_v19  ;;  %s958_s30 = smov [#allocation8]  }
  0x77   : > { %700 = vmatmul.mubr.msk.bf16.vlgmr.msra.gmra.mrb[0].mxu0 %vm306_vm1, %v239_v15  ;;  %v249_v25 = vrot.slane %v244_v22, %v248_v20  ;;  %v257_v26 = vrot.slane %v244_v22, %v256_v21  ;;  %v253_v27 = vrot.slane %v244_v22, %v252_v23  ;;  %v276_v42 = vsub.s32 7, %v247_v19  ;;  %p884_p13 = pnand %p883_p9, %p1252_p12  ;;  %s886_s29 = sshll.u32 %s958_s30, 4  ;;  %s887_s29 = int_to_ptr.vmem [resolvable:$false] %s886_s29 }
  0x78   : > { %702 = vmatmul.mubr.msk.bf16.vlgmr.msra.gmra.mrb[0].mxu1 %vm306_vm1, %v239_v15  ;;  %418 = vmatpush1.bf16.msra.mxu0 %v324_v16  ;;  %v261_v28 = vrot.slane %v244_v22, %v260_v24  ;;  %v265_v51 = vrot.slane %v244_v22, %v264_v35  ;;  %v273_v52 = vrot.slane %v244_v22, %v272_v36  ;;  %s888_s4 = scalar_lea.vmem %s887_s29, 1024  ;;  %p889_p2 = scmp.lt.s32.totalorder %s1188_s18, %s887_s29 }
  0x79   : > { %459 = vmatpush1.bf16.msra.mxu1 %v330_v17  ;;  %449 = vmatprep.mubr.bf16.mxu0 %v957_v0  ;;  %v269_v55 = vrot.slane %v244_v22, %v268_v41  ;;  %v277_v56 = vrot.slane %v244_v22, %v276_v42  ;;  %p885_p6 = pneg %p884_p13  ;;  %p890_p0 = scmp.lt.s32.totalorder %s888_s4, %s882_s5 }
  0x7a   : > { %490 = vmatprep.mubr.bf16.mxu1 %v957_v0 }
  0x7b   : > { %p891_p3 = por %p890_p0, %p889_p2 }
  0x7d   : > { %p892_p1 = pnand %p891_p3, %p885_p6 }
  0x7f   : > { %704 = vmatmul.mubr.msk.bf16.vlgmr.msra.gmra.mrb[4].mxu0 %vm306_vm1, %v239_v15 }
  0x80   : > { %706 = vmatmul.mubr.msk.bf16.vlgmr.msra.gmra.mrb[4].mxu1 %vm306_vm1, %v239_v15 }
 0x14a   : > { %v369_v29 = vpop.f32.mrb[0].mxu0 }
 0x14b   : > { %v410_v30 = vpop.f32.mrb[0].mxu1  ;;  %v370_v31 = vadd.f32 %v369_v29, %v249_v25  ;;  %v371_v33 = vpop.f32.mrb[1].mxu0 }
 0x14c   : > { %v411_v32 = vadd.f32 %v410_v30, %v257_v26  ;;  %v412_v34 = vpop.f32.mrb[1].mxu1  ;;  %v372_v37 = vadd.f32 %v371_v33, %v253_v27  ;;  %v373_v39 = vpop.f32.mrb[2].mxu0 }
 0x14d   : > { %v413_v38 = vadd.f32 %v412_v34, %v261_v28  ;;  %v414_v40 = vpop.f32.mrb[2].mxu1  ;;  %vm499_vm2 = vcmp.ge.f32.partialorder %v370_v31, 0.0  ;;  %v507_v43 = vmul.f32 0.01, %v370_v31  ;;  %v374_v49 = vpop.f32.mrb[3].mxu0 }
 0x14e   : > { %vm501_vm3 = vcmp.ge.f32.partialorder %v411_v32, 0.0  ;;  %v509_v44 = vmul.f32 0.01, %v411_v32  ;;  %vm500_vm4 = vcmp.ge.f32.partialorder %v372_v37, 0.0  ;;  %v508_v45 = vmul.f32 0.01, %v372_v37 }
 0x14f   : > { %vm502_vm5 = vcmp.ge.f32.partialorder %v413_v38, 0.0  ;;  %v510_v46 = vmul.f32 0.01, %v413_v38  ;;  %v515_v47 = vsel %vm499_vm2, %v370_v31, %v507_v43  ;;  %v415_v50 = vpop.f32.mrb[3].mxu1 }
 0x150   : > { %v517_v48 = vsel %vm501_vm3, %v411_v32, %v509_v44  ;;  %v516_v53 = vsel %vm500_vm4, %v372_v37, %v508_v45 }
 0x151   : > { %v518_v54 = vsel %vm502_vm5, %v413_v38, %v510_v46  ;;  %v718_v57 = vpack.c.bf16 %v516_v53, %v515_v47 }
 0x152   : > { %v719_v58 = vpack.c.bf16 %v518_v54, %v517_v48  ;;  %v451_v59 = vpop.f32.mrb[4].mxu0 }
 0x153   : > { %v492_v60 = vpop.f32.mrb[4].mxu1  ;;  %555 = vst [vmem:[%s1177_s9] sm:$0xff] %v718_v57  ;;  %v452_v61 = vadd.f32 %v451_v59, %v265_v51  ;;  %v453_v63 = vpop.f32.mrb[5].mxu0 }
 0x154   : > { %556 = vst [vmem:[%s1177_s9 + $0x8] sm:$0xff] %v719_v58  ;;  %v493_v62 = vadd.f32 %v492_v60, %v273_v52  ;;  %v494_v0 = vpop.f32.mrb[5].mxu1  ;;  %v454_v1 = vadd.f32 %v453_v63, %v269_v55  ;;  %v455_v3 = vpop.f32.mrb[6].mxu0 }
 0x155   : > { %v495_v2 = vadd.f32 %v494_v0, %v277_v56  ;;  %v496_v4 = vpop.f32.mrb[6].mxu1  ;;  %vm503_vm6 = vcmp.ge.f32.partialorder %v452_v61, 0.0  ;;  %v511_v5 = vmul.f32 0.01, %v452_v61  ;;  %v456_v11 = vpop.f32.mrb[7].mxu0 }
 0x156   : > { %vm505_vm7 = vcmp.ge.f32.partialorder %v493_v62, 0.0  ;;  %v513_v6 = vmul.f32 0.01, %v493_v62  ;;  %vm504_vm8 = vcmp.ge.f32.partialorder %v454_v1, 0.0  ;;  %v512_v7 = vmul.f32 0.01, %v454_v1 }
 0x157   : > { %vm506_vm9 = vcmp.ge.f32.partialorder %v495_v2, 0.0  ;;  %v514_v8 = vmul.f32 0.01, %v495_v2  ;;  %v519_v9 = vsel %vm503_vm6, %v452_v61, %v511_v5  ;;  %v497_v12 = vpop.f32.mrb[7].mxu1 }
 0x158   : > { %v521_v10 = vsel %vm505_vm7, %v493_v62, %v513_v6  ;;  %v520_v13 = vsel %vm504_vm8, %v454_v1, %v512_v7 }
 0x159   : > { %v522_v14 = vsel %vm506_vm9, %v495_v2, %v514_v8  ;;  %v720_v15 = vpack.c.bf16 %v520_v13, %v519_v9 }
 0x15a   : > { %v721_v16 = vpack.c.bf16 %v522_v14, %v521_v10 }
 0x15b   : > { %557 = vst [vmem:[%s1177_s9 + $0x10] sm:$0xff] %v720_v15 }
 0x15c   : > { %558 = vst [vmem:[%s1177_s9 + $0x18] sm:$0xff] %v721_v16 }
 0x15d   : > { %895 = shalt.err (!%p892_p1)
}
 0x15e   : > { %s896_s8 = scalar_lea.hbm %s1186_s22, 512  ;;  %s900_s11 = scalar_lea.hbm %s1235_s3, 1024 }
 0x15f   : > { %p897_p4 = scmp.ne.s32.totalorder %s1186_s22, %s896_s8  ;;  %p901_p7 = scmp.lt.u32.totalorder %s1186_s22, %s1235_s3 }
 0x160   : > { %p902_p5 = scmp.lt.u32.totalorder %s900_s11, %s896_s8  ;;  %p904_p9 = scmp.lt.u32.totalorder %s896_s8, %s1186_s22 }
 0x161   : > { %p898_p11 = pnand %p897_p4, %p1252_p12 }
 0x162   : > { %p903_p10 = por %p902_p5, %p901_p7 }
 0x163   : > { %p899_p8 = pneg %p898_p11 }
 0x164   : > { %p905_p13 = por %p904_p9, %p903_p10 }
 0x166   : > { %p906_p6 = pnand %p905_p13, %p899_p8 }
 0x168   : > { %909 = shalt.err (!%p906_p6)
}
 0x169   : > { %731 = dma.vmem_to_hbm [thread:$0]  (%p1252_p12), %s1188_s18, 512, %s1186_s22, %s560_s27  }
 0x16a PF: > { %s586_s23 = sand.u32 1, %s940_s12   ;;  %p1253_p2 = scmp.ne.s32.totalorder %s1244_s25, 0 }
 0x16b   : > { %p1254_p0 = scmp.ge.s32.totalorder %s952_s15, 2  ;;  %s587_s26 = scalar_lea.sflag [#allocation4], %s586_s23 }
 0x16d   : > { %p745_p3 = pnand %p1254_p0, %p1253_p2 }
 0x16f   : > { %935 = dma.done.wait (!%p745_p3), %s587_s26, 512  }
 0x170   : > { %937 = vsyncadd (!%p745_p3), %s587_s26, 4294966784  ;;  %p17_p1 = scmp.ge.s32.totalorder %s1000_s16, 4   ;;  %s1255_s12 = smov %s944_s13 }
 0x171   : > { %s1256_s13 = smov %s948_s14  ;;  %s1257_s14 = smov %s1011_s19 }
 0x172   : > { %s1258_s15 = smov %s1000_s16  ;;  %19 = sbr.rel (!%p17_p1) target bundleno = 6 (0x6), region = 93 }
 0x179   :  { %592 = vsyncpa [#allocation3], 1 }
 0x17a   :  { %594 = vsyncpa [#allocation3 + $0x1], 1 }
 0x17b   :  { %595 = vsyncpa [#allocation6], 1 }
 0x17c   :  { %597 = vsyncpa [#allocation6 + $0x1], 1 }
 0x17d   :  { %598 = vsyncpa [#allocation4], 1 }
 0x17e   :  { %600 = vsyncpa [#allocation4 + $0x1], 1 }

</bundles_post_ra>
